<compile_context>
chip_gen: v7x
topology: tpu7x:2x2x1
jax: 0.10.0
libtpu: 0.0.40
codegen_flags: <defaults>
</compile_context>

<pallas_src>
from functools import partial

import jax
import jax.numpy as jnp
from jax import lax
from jax.experimental import pallas as pl
from jax.experimental.pallas import tpu as pltpu


def _cdiv(a, b):
    return -(-a // b)


def _default_budget():
    """Per-tile byte budget for the flattened (C, S) slab, generation-aware."""
    try:
        vmem_cap = pltpu.get_tpu_info().vmem_capacity_bytes
    except Exception:
        vmem_cap = 64 << 20  # conservative (v7x per-TC physical) fallback
    # Keep double-buffered inputs + outputs well inside every generation's
    # scoped VMEM (v5e 16 MiB default scoped .. v7x 64 MiB physical).
    return int(max(1 << 20, min(4 << 20, vmem_cap // 32)))


# --------------- Fused single-pass kernel (slab fits VMEM) -------------------

def _fused_kernel(x_ref, w_ref, b_ref, o_ref, *, inv_s):
    # x_ref: (1, C, S); w_ref: (C_in, C_out) pre-transposed; b_ref: (1, C)
    x = x_ref[...]
    pooled = jnp.sum(x.astype(jnp.float32), axis=-1) * inv_s          # (1, C)
    z = jnp.dot(pooled, w_ref[...], preferred_element_type=jnp.float32)
    y = jax.nn.sigmoid(z + b_ref[...]).astype(x.dtype)                # (1, C)
    o_ref[...] = (x * y[:, :, None]).astype(o_ref.dtype)


# --------------- Pass 1: per-(n, c) running sum over the S axis --------------

def _pool_sum_kernel(x_ref, sum_ref, *, s_total, t_s, mask_tail):
    # x_ref  : (1, C, t_s) tile; sum_ref: (1, C) f32 accumulator, VMEM-resident
    # across the "arbitrary" S axis.
    k = pl.program_id(1)

    @pl.when(k == 0)
    def _():
        sum_ref[...] = jnp.zeros_like(sum_ref)

    x = x_ref[...].astype(jnp.float32)
    if mask_tail:
        # Boundary block: zero the lanes past the true extent S (OOB input
        # data is unspecified).  Cheap VALU work; kernel is HBM-bound anyway.
        lane = lax.broadcasted_iota(jnp.int32, x.shape, dimension=2) + k * t_s
        x = jnp.where(lane < s_total, x, 0.0)
    sum_ref[...] += jnp.sum(x, axis=-1)


# --------------- Pass 2: broadcast gate multiply ------------------------------

def _gate_kernel(x_ref, y_ref, o_ref):
    # x_ref: (1, C, t_s), y_ref: (1, C) gate (already in x dtype)
    o_ref[...] = (x_ref[...] * y_ref[...][:, :, None]).astype(o_ref.dtype)


# --------------- Public wrapper ----------------------------------------------

def se_gating(x, weight, bias, *, tile_budget_bytes=None):
    """x: (N, C, T, H, W); weight: (C, C) (Conv3d 1x1x1 weight squeezed);
    bias: (C,). Returns x * sigmoid(Conv3d(AdaptiveAvgPool3d(1)(x)))."""
    N, C, T, H, W = x.shape
    S = T * H * W
    itemsize = jnp.dtype(x.dtype).itemsize
    budget = int(tile_budget_bytes) if tile_budget_bytes else _default_budget()

    x_flat = x.reshape(N, C, S)
    w_t = weight.astype(jnp.float32).T               # (C_in, C_out)
    b2 = bias.astype(jnp.float32).reshape(1, C)

    slab_bytes = C * S * itemsize

    # ---- fused path: one pass over x (reads x once, writes once) -----------
    if slab_bytes <= budget:
        vmem_limit = int(min(max(6 * slab_bytes + (2 << 20), 8 << 20), 48 << 20))
        out_flat = pl.pallas_call(
            partial(_fused_kernel, inv_s=float(1.0 / S)),
            out_shape=jax.ShapeDtypeStruct((N, C, S), x.dtype),
            grid_spec=pltpu.PrefetchScalarGridSpec(
                num_scalar_prefetch=0,
                grid=(N,),
                in_specs=[
                    pl.BlockSpec((1, C, S), lambda n: (n, 0, 0)),
                    pl.BlockSpec((C, C), lambda n: (0, 0)),
                    pl.BlockSpec((1, C), lambda n: (0, 0)),
                ],
                out_specs=pl.BlockSpec((1, C, S), lambda n: (n, 0, 0)),
            ),
            compiler_params=pltpu.CompilerParams(
                dimension_semantics=("parallel",),
                vmem_limit_bytes=vmem_limit,
            ),
        )(x_flat, w_t, b2)
        return out_flat.reshape(N, C, T, H, W)

    # ---- streaming path: lane-dense S tiles, no HBM pad copy ---------------
    t_s = (budget // (C * itemsize)) // 128 * 128
    t_s = int(max(128, min(t_s, 2048)))
    n_s = _cdiv(S, t_s)
    mask_tail = (S % t_s) != 0
    tile_bytes = C * t_s * itemsize
    vmem_limit = int(min(max(8 * tile_bytes + (2 << 20), 8 << 20), 48 << 20))

    # pass 1: pooled channel sums (N, C); reduction axis last + "arbitrary"
    sums = pl.pallas_call(
        partial(_pool_sum_kernel, s_total=S, t_s=t_s, mask_tail=mask_tail),
        out_shape=jax.ShapeDtypeStruct((N, C), jnp.float32),
        grid_spec=pltpu.PrefetchScalarGridSpec(
            num_scalar_prefetch=0,
            grid=(N, n_s),
            in_specs=[pl.BlockSpec((1, C, t_s), lambda n, k: (n, 0, k))],
            out_specs=pl.BlockSpec((1, C), lambda n, k: (n, 0)),
        ),
        compiler_params=pltpu.CompilerParams(
            dimension_semantics=("parallel", "arbitrary"),
            vmem_limit_bytes=vmem_limit,
        ),
    )(x_flat)

    # tiny 1x1x1-conv + sigmoid, hoisted out of the per-tile hot loop
    pooled = sums * jnp.float32(1.0 / S)             # mean over T*H*W
    y = jax.nn.sigmoid(pooled @ w_t + b2).astype(x.dtype)   # (N, C) gate

    # pass 2: gating multiply, fully parallel over (N, S tiles)
    out_flat = pl.pallas_call(
        _gate_kernel,
        out_shape=jax.ShapeDtypeStruct((N, C, S), x.dtype),
        grid_spec=pltpu.PrefetchScalarGridSpec(
            num_scalar_prefetch=0,
            grid=(N, n_s),
            in_specs=[
                pl.BlockSpec((1, C, t_s), lambda n, s: (n, 0, s)),
                pl.BlockSpec((1, C), lambda n, s: (n, 0)),
            ],
            out_specs=pl.BlockSpec((1, C, t_s), lambda n, s: (n, 0, s)),
        ),
        compiler_params=pltpu.CompilerParams(
            dimension_semantics=("parallel", "parallel"),
            vmem_limit_bytes=vmem_limit,
        ),
    )(x_flat, y)

    return out_flat.reshape(N, C, T, H, W)


def se_gating_ref(x, weight, bias):
    """Pure-JAX reference mirroring the PyTorch forward."""
    pooled = jnp.mean(x, axis=(2, 3, 4))             # (N, C)
    z = pooled @ weight.T + bias[None, :]
    y = jax.nn.sigmoid(z)
    return x * y[:, :, None, None, None]


if __name__ == "__main__":
    # inplanes = C channels; 5-D input (N, C, T, H, W) for Conv3d / AdaptiveAvgPool3d.
    N, C, T, H, W = 2, 16, 4, 8, 8

    key = jax.random.PRNGKey(0)
    kx, kw, kb = jax.random.split(key, 3)

    x = jax.random.normal(kx, (N, C, T, H, W), dtype=jnp.float32)
    # Conv3d(inplanes, inplanes, kernel_size=1) weight is (C, C, 1, 1, 1);
    # keep the squeezed (C_out, C_in) matrix. Deterministic synthetic init.
    bound = 1.0 / (float(C) ** 0.5)
    conv_w = jax.random.uniform(kw, (C, C), minval=-bound, maxval=bound,
                                dtype=jnp.float32)
    conv_b = jax.random.uniform(kb, (C,), minval=-bound, maxval=bound,
                                dtype=jnp.float32)

    # 1) fused single-pass path (slab fits VMEM budget)
    out = jax.block_until_ready(se_gating(x, conv_w, conv_b))
    ref = se_gating_ref(x, conv_w, conv_b)
    assert out.shape == (N, C, T, H, W)
    assert jnp.allclose(out, ref, atol=1e-5, rtol=1e-5), "fused-path mismatch"

    # 2) streaming path (force a tiny tile budget), S a multiple of the tile
    out_s = jax.block_until_ready(
        se_gating(x, conv_w, conv_b, tile_budget_bytes=8192))
    assert jnp.allclose(out_s, ref, atol=1e-5, rtol=1e-5), "streaming mismatch"

    # 3) streaming path with a masked ragged tail (S = 196, not 128-aligned)
    x2 = jax.random.normal(kx, (1, 16, 4, 7, 7), dtype=jnp.float32)
    ref2 = se_gating_ref(x2, conv_w, conv_b)
    out2 = jax.block_until_ready(
        se_gating(x2, conv_w, conv_b, tile_budget_bytes=8192))
    assert jnp.allclose(out2, ref2, atol=1e-5, rtol=1e-5), "tail-mask mismatch"

    # 4) fused path on the non-128-multiple S as well
    out3 = jax.block_until_ready(se_gating(x2, conv_w, conv_b))
    assert jnp.allclose(out3, ref2, atol=1e-5, rtol=1e-5), "fused ragged mismatch"

    print("KERNEL_OK")
</pallas_src>

<mosaic_0001>
module attributes {stable_mosaic.version = 11 : i64} {
  func.func @_fused_kernel(%arg0: i32, %arg1: memref<1x16x256xf32, #tpu.memory_space<vmem>>, %arg2: memref<16x16xf32, #tpu.memory_space<vmem>>, %arg3: memref<1x16xf32, #tpu.memory_space<vmem>>, %arg4: memref<1x16x256xf32, #tpu.memory_space<vmem>>) attributes {dimension_semantics = [#tpu.dimension_semantics<parallel>], iteration_bounds = array<i64: 2>, scalar_prefetch = 0 : i64, scratch_operands = 0 : i64, tpu.core_type = #tpu.core_type<tc>, window_params = [{transform_indices = @transform_0, window_bounds = array<i64: 1, 16, 256>}, {pipeline_mode = #tpu.pipeline_mode<synchronous>, transform_indices = @transform_1, window_bounds = array<i64: 16, 16>}, {pipeline_mode = #tpu.pipeline_mode<synchronous>, transform_indices = @transform_2, window_bounds = array<i64: 1, 16>}, {transform_indices = @transform_3, window_bounds = array<i64: 1, 16, 256>}]} {
    %c0 = arith.constant 0 : index
    %c0_0 = arith.constant 0 : index
    %c0_1 = arith.constant 0 : index
    %0 = vector.load %arg1[%c0, %c0_0, %c0_1] : memref<1x16x256xf32, #tpu.memory_space<vmem>>, vector<1x16x256xf32>
    %cst = arith.constant dense<0.000000e+00> : vector<1x16xf32>
    %1 = vector.multi_reduction <add>, %0, %cst [2] : vector<1x16x256xf32> to vector<1x16xf32>
    %cst_2 = arith.constant 3.906250e-03 : f32
    %2 = vector.broadcast %cst_2 : f32 to vector<1x16xf32>
    %3 = arith.mulf %1, %2 : vector<1x16xf32>
    %c0_3 = arith.constant 0 : index
    %c0_4 = arith.constant 0 : index
    %4 = vector.load %arg2[%c0_3, %c0_4] : memref<16x16xf32, #tpu.memory_space<vmem>>, vector<16x16xf32>
    %cst_5 = arith.constant dense<0.000000e+00> : vector<1x16xf32>
    %5 = tpu.matmul %3, %4, %cst_5 {dimension_numbers = #tpu.dot_dimension_numbers<[1], [0], [0], [1], [0, 0, 1, 1], [], []>} : vector<1x16xf32>, vector<16x16xf32>, vector<1x16xf32> -> vector<1x16xf32>
    %c0_6 = arith.constant 0 : index
    %c0_7 = arith.constant 0 : index
    %6 = vector.load %arg3[%c0_6, %c0_7] : memref<1x16xf32, #tpu.memory_space<vmem>>, vector<1x16xf32>
    %7 = arith.addf %5, %6 : vector<1x16xf32>
    %8 = arith.negf %7 : vector<1x16xf32>
    %9 = math.exp %8 : vector<1x16xf32>
    %cst_8 = arith.constant 1.000000e+00 : f32
    %10 = vector.broadcast %cst_8 : f32 to vector<1x16xf32>
    %11 = arith.addf %10, %9 : vector<1x16xf32>
    %12 = arith.divf %10, %11 : vector<1x16xf32>
    %13 = vector.shape_cast %12 : vector<1x16xf32> to vector<1x16x1xf32>
    %14 = vector.broadcast %13 : vector<1x16x1xf32> to vector<1x16x256xf32>
    %15 = arith.mulf %0, %14 : vector<1x16x256xf32>
    %c0_9 = arith.constant 0 : index
    %c0_10 = arith.constant 0 : index
    %c0_11 = arith.constant 0 : index
    %16 = vector.load %arg4[%c0_9, %c0_10, %c0_11] : memref<1x16x256xf32, #tpu.memory_space<vmem>>, vector<1x16x256xf32>
    tpu.vector_store %arg4[%c0_9, %c0_10, %c0_11], %15 {strides = array<i32>} : memref<1x16x256xf32, #tpu.memory_space<vmem>>, vector<1x16x256xf32>,
    return
  }
  func.func @transform_0(%arg0: i32) -> (i32, i32, i32) {
    %c0_i32 = arith.constant 0 : i32
    %c0_i32_0 = arith.constant 0 : i32
    %c0_i32_1 = arith.constant 0 : i32
    return %arg0, %c0_i32, %c0_i32_0 : i32, i32, i32
  }
  func.func @transform_1(%arg0: i32) -> (i32, i32) {
    %c0_i32 = arith.constant 0 : i32
    %c0_i32_0 = arith.constant 0 : i32
    %c0_i32_1 = arith.constant 0 : i32
    return %c0_i32, %c0_i32_0 : i32, i32
  }
  func.func @transform_2(%arg0: i32) -> (i32, i32) {
    %c0_i32 = arith.constant 0 : i32
    %c0_i32_0 = arith.constant 0 : i32
    %c0_i32_1 = arith.constant 0 : i32
    return %c0_i32, %c0_i32_0 : i32, i32
  }
  func.func @transform_3(%arg0: i32) -> (i32, i32, i32) {
    %c0_i32 = arith.constant 0 : i32
    %c0_i32_0 = arith.constant 0 : i32
    %c0_i32_1 = arith.constant 0 : i32
    return %arg0, %c0_i32, %c0_i32_0 : i32, i32, i32
  }
}

</mosaic_0001>

<bundles_post_ra>
// kernel: tpu_custom_call.1
= control target key start
LH: loop header
LB: loop body
LE: loop exit
PB: predicated region body
PF: predicated region fallthrough
CT: control target
= control target key end

     0   :  { %8 = vsyncpa [#allocation3], 0  ;;  %s902_s0 = inlined_call_operand.hbm [shape: f32[2,16,256], index: 0, kind: input, shape index: {}]   ;;  %s903_s1 = inlined_call_operand.hbm [shape: f32[16,16], index: 1, kind: input, shape index: {}]   ;;  %s904_s2 = inlined_call_operand.vmem [shape: f32[1,16], index: 2, kind: input, shape index: {}]   ;;  %s905_s3 = inlined_call_operand.hbm [shape: f32[2,16,256], index: 3, kind: output, shape index: {}]  }
   0x1   :  { %10 = vsyncpa [#allocation3 + $0x1], 0 }
   0x2   :  { %11 = vsyncpa [#allocation6], 0 }
   0x3   :  { %12 = vsyncpa [#allocation4], 0 }
   0x4   :  { %14 = vsyncpa [#allocation4 + $0x1], 0  ;;  %s694_s12 = smov 0   ;;  %s696_s13 = smov 0  }
   0x5   :  { %s698_s14 = smov 0   ;;  %s700_s15 = smov 0  }
   0x6 LB: > { %s715_s16 = sadd.s32 4294967295, %s660_s15   ;;  %s429_s17 = sadd.s32 4294967294, %s660_s15   ;;  %s660_s15 = sphi %s700_s15, %s925_s15   ;;  %s656_s14 = sphi %s698_s14, %s924_s14   ;;  %s652_s13 = sphi %s696_s13, %s923_s13   ;;  %s648_s12 = sphi %s694_s12, %s922_s12  }
   0x7   : > { %p40_p0 = scmp.ne.s32.totalorder %s652_s13, %s648_s12  ;;  %p906_p1 = scmp.eq.s32.totalorder %s715_s16, 0 }
   0x8   : > { %p112_p3 = scmp.eq.s32.totalorder %s429_s17, 1  ;;  %p430_p5 = scmp.ge.s32.totalorder %s660_s15, 1 }
   0x9   : > { %p724_p4 = por %p906_p1, %p40_p0  ;;  %p119_p7 = scmp.lt.s32.totalorder %s660_s15, 3 }
   0xa   : > { %p729_p6 = por %p112_p3, %p40_p0  ;;  %s662_s21 = smov [#allocation5]  }
   0xb   : > { %s909_s18 = scalar_select %p724_p4, 1, 0 }
   0xc   : > { %s910_s19 = scalar_select %p729_p6, 1, 0 }
   0xd   : > { %p734_p8 = pnand %p430_p5, %p119_p7  ;;  %s131_s22 = sshll.u32 %s662_s21, 4  ;;  %s738_s22 = int_to_ptr.vmem [resolvable:$true] %s131_s22 }
   0xe   : > { %s750_s24 = sadd.s32 1, %s660_s15   ;;  %s27_s25 = sadd.s32 1, %s656_s14 }
   0xf   : > { %s911_s20 = scalar_select %p734_p8, 1, 0 }
  0x10   : > { %p470_p9 = pneg %p734_p8  ;;  %s24_s26 = ssub.s32 %s660_s15, %s750_s24 }
  0x11   : > { %s532_s29 = scalar_lea.hbm %s903_s1, 256 }
  0x12   : > { %p745_p11 = pnand %p470_p9, %p906_p1  ;;  %p533_p12 = scmp.ne.s32.totalorder %s903_s1, %s532_s29 }
  0x13   : > { %p539_p5 = scmp.lt.u32.totalorder %s532_s29, %s903_s1 }
  0x14   : > { %p534_p13 = pneg %p745_p11 }
  0x16   : > { %p535_p0 = pnand %p534_p13, %p533_p12 }
  0x18   : > { %p536_p3 = pneg %p535_p0 }
  0x1a   : > { %p541_p7 = pnand %p539_p5, %p536_p3 }
  0x1c   : > { %544 = shalt.err (!%p541_p7)
}
  0x1d   : > { %s545_s7 = scalar_lea.vmem %s738_s22, 256  ;;  %p553_p2 = scmp.lt.s32.totalorder %s738_s22, %s738_s22 }
  0x1e   : > { %p546_p9 = scmp.ne.s32.totalorder %s738_s22, %s545_s7  ;;  %p554_p6 = scmp.lt.s32.totalorder %s545_s7, %s545_s7 }
  0x20   : > { %p548_p10 = pnand %p546_p9, %p534_p13  ;;  %p555_p4 = por %p554_p6, %p553_p2 }
  0x22   : > { %p549_p1 = pneg %p548_p10 }
  0x24   : > { %p556_p8 = pnand %p555_p4, %p549_p1 }
  0x26   : > { %559 = shalt.err (!%p556_p8)
}
  0x27   : > { %s663_s8 = smov 128   ;;  %s664_s9 = smov 8  }
  0x28   : > { %473 = dma.hbm_to_vmem [thread:$0]  (!%p745_p11), %s903_s1, 256, %s738_s22, [#allocation6], %s663_s8, %s663_s8, %s664_s9  }
  0x29   : > { %p25_p2 = scmp.eq.s32.totalorder %s24_s26, 0  ;;  %p34_p1 = scmp.ne.s32.totalorder %s656_s14, %s652_s13 }
  0x2a   : > { %p35_p4 = scmp.eq.s32.totalorder %s660_s15, 0  ;;  %p483_p6 = scmp.lt.s32.totalorder %s660_s15, 2 }
  0x2b   : > { %s781_s17 = scalar_select %p25_p2, %s656_s14, %s27_s25  }
  0x2c   : > { %p36_p8 = por %p35_p4, %p34_p1  ;;  %p913_p10 = scmp.eq.s32.totalorder %s715_s16, 1 }
  0x2d   : > { %s148_s27 = sand.u32 1, %s656_s14   ;;  %s447_s28 = sshll.u32 %s660_s15, 9 }
  0x2e   : > { %p785_p12 = por %p913_p10, %p34_p1  ;;  %s433_s29 = sshll.u32 %s148_s27, 5 }
  0x2f   : > { %s794_s4 = scalar_lea.hbm %s902_s0, %s447_s28  ;;  %s152_s22 = scalar_lea.vmem [#allocation2], %s433_s29 }
  0x30   : > { %s159_s25 = sshll.u32 %s152_s22, 4  ;;  %p796_p11 = pnand %p483_p6, %p36_p8  ;;  %s800_s25 = int_to_ptr.vmem [resolvable:$true] %s159_s25 }
  0x31   : > { %s802_s5 = scalar_lea.sflag [#allocation3], %s148_s27  ;;  %s560_s6 = scalar_lea.hbm %s794_s4, 512 }
  0x32   : > { %p561_p13 = scmp.ne.s32.totalorder %s794_s4, %s560_s6  ;;  %p562_p0 = pneg %p796_p11 }
  0x33   : > { %s565_s9 = scalar_lea.hbm %s902_s0, 1024  ;;  %p566_p7 = scmp.lt.u32.totalorder %s794_s4, %s902_s0 }
  0x34   : > { %p563_p3 = pnand %p562_p0, %p561_p13  ;;  %p567_p9 = scmp.lt.u32.totalorder %s565_s9, %s560_s6 }
  0x35   : > { %p569_p1 = scmp.lt.u32.totalorder %s560_s6, %s794_s4 }
  0x36   : > { %p564_p5 = pneg %p563_p3  ;;  %p568_p2 = por %p567_p9, %p566_p7 }
  0x38   : > { %p570_p4 = por %p569_p1, %p568_p2 }
  0x3a   : > { %p571_p6 = pnand %p570_p4, %p564_p5 }
  0x3c   : > { %574 = shalt.err (!%p571_p6)
}
  0x3d   : > { %s575_s27 = scalar_lea.vmem %s800_s25, 512  ;;  %s665_s28 = smov [#allocation2]  }
  0x3e   : > { %p576_p8 = scmp.ne.s32.totalorder %s800_s25, %s575_s27  ;;  %s580_s29 = sshll.u32 %s665_s28, 4  ;;  %s581_s29 = int_to_ptr.vmem [resolvable:$false] %s580_s29 }
  0x3f   : > { %s582_s23 = scalar_lea.vmem %s581_s29, 1024  ;;  %p583_p3 = scmp.lt.s32.totalorder %s800_s25, %s581_s29 }
  0x40   : > { %p578_p10 = pnand %p576_p8, %p562_p0  ;;  %p584_p7 = scmp.lt.s32.totalorder %s582_s23, %s575_s27 }
  0x42   : > { %p579_p13 = pneg %p578_p10  ;;  %p585_p9 = por %p584_p7, %p583_p3 }
  0x44   : > { %p586_p2 = pnand %p585_p9, %p579_p13 }
  0x46   : > { %589 = shalt.err (!%p586_p2)
}
  0x47   : > { %s666_s30 = smov 256   ;;  %s667_s22 = smov 16  }
  0x48   : > { %477 = dma.hbm_to_vmem [thread:$0]  (!%p796_p11), %s794_s4, 512, %s800_s25, %s802_s5, %s666_s30, %s666_s30, %s667_s22  }
  0x49   : > { %p916_p0 = scmp.ne.s32.totalorder %s911_s20, 0 }
  0x4a   : > { %s833_s6 = sand.u32 (!%p916_p0), 1, %s652_s13   ;;  %p917_p5 = scmp.ne.s32.totalorder (!%p916_p0), %s909_s18, 0 }
  0x4b   : > { %171 = sbr.rel (%p916_p0) target bundleno = 618 (0x26a), region = 32  ;;  %s437_s7 = sshll.u32 (!%p916_p0), %s833_s6, 5 }
  0x4c   : > { %s174_s8 = scalar_lea.sflag (!%p916_p0), [#allocation3], %s833_s6  ;;  %s177_s9 = scalar_lea.vmem (!%p916_p0), [#allocation2], %s437_s7 }
  0x52   : > { %635 = dma.done.wait (%p917_p5), %s174_s8, 512  }
  0x53   : > { %637 = vsyncadd (%p917_p5), %s174_s8, 4294966784  ;;  %p918_p11 = scmp.eq.s32.totalorder %s715_s16, 0 }
  0x55   : > { %639 = dma.done.wait (%p918_p11), [#allocation6], 256   ;;  %p919_p1 = pmov %p918_p11 }
  0x56   : > { %v204_v0 = vld [vmem:[%s177_s9] sm:$0xff]  ;;  %v205_v1 = vld [vmem:[%s177_s9 + $0x8] sm:$0xff]  ;;  %v206_v2 = vld [vmem:[%s177_s9 + $0x10] sm:$0xff]  ;;  %v668_v9 = vmov 0.0|0.0   ;;  %vm669_vm0 = vmmov 0   ;;  %v670_v10 = vmov 0.0   ;;  %v221_v11 = vlaneseq }
  0x57   : > { %641 = vsyncadd (%p919_p1), [#allocation6], 4294967040  ;;  %v208_v3 = vadd.f32 %v205_v1, %v204_v0  ;;  %v207_v4 = vld [vmem:[%s177_s9 + $0x18] sm:$0xff]  ;;  %v216_v6 = vld [vmem:[#allocation5] sm:$0xff]  ;;  %459 = vmatprep.subr.bf16.mxu0 %v668_v9  ;;  %456 = vmatprep.mubr.msk.f32.mxu0 %vm669_vm0, %v670_v10  ;;  %vm232_vm1 = vcmask 130112   ;;  %vm234_vm2 = vcmask 130048  }
  0x58   : > { %v211_v5 = vadd.f32 %v207_v4, %v206_v2  ;;  %v217_v7 = vld [vmem:[#allocation5 + $0x8] sm:$0xff]  ;;  %v222_v12 = vand.u32 127, %v221_v11  ;;  %v224_v13 = vshrl.u32 %v221_v11, 7  ;;  %v218_v24 = vld [vmem:[%s904_s2] sm:$0x1]  ;;  %s203_s4 = scalar_lea.vmem [#allocation7], %s437_s7 }
  0x59   : > { %209 = vadd.xlane.f32.xlu0 %v208_v3  ;;  %v460_v8 = vpack.c.bf16 %v217_v7, %v216_v6  ;;  %s346_s25 = sshll.u32 %s203_s4, 4  ;;  %s448_s26 = sshll.u32 %s715_s16, 9  ;;  %s853_s25 = int_to_ptr.vmem [resolvable:$true] %s346_s25 }
  0x5a   : > { %v227_v14 = vadd.s32 4294967288, %v222_v12  ;;  %v225_v16 = vsub.s32 %v222_v12, %v224_v13  ;;  %v315_v31 = vsub.s32 0, %v224_v13  ;;  %s858_s11 = scalar_lea.hbm %s905_s3, %s448_s26  ;;  %s333_s27 = scalar_lea.sflag [#allocation4], %s833_s6 }
  0x5b   : > { %461 = vmatpush3.bf16.msra.mxu0 %v460_v8  ;;  %s590_s28 = scalar_lea.vmem %s853_s25, 512  ;;  %s671_s16 = smov [#allocation7]  }
  0x5c   : > { %v230_v18 = vsub.s32 %v227_v14, %v224_v13  ;;  %p591_p4 = scmp.ne.s32.totalorder %s853_s25, %s590_s28  ;;  %s594_s29 = sshll.u32 %s671_s16, 4  ;;  %s595_s29 = int_to_ptr.vmem [resolvable:$false] %s594_s29 }
  0x5d   : > { %212 = vadd.xlane.f32.xlu0 %v211_v5  ;;  %s596_s23 = scalar_lea.vmem %s595_s29, 1024  ;;  %p597_p10 = scmp.lt.s32.totalorder %s853_s25, %s595_s29 }
  0x5e   : > { %p592_p6 = pnand %p591_p4, %p785_p12  ;;  %p598_p13 = scmp.lt.s32.totalorder %s596_s23, %s590_s28 }
  0x60   : > { %p593_p8 = pneg %p592_p6  ;;  %p599_p3 = por %p598_p13, %p597_p10 }
  0x62   : > { %p600_p7 = pnand %p599_p3, %p593_p8 }
  0xe6   : > { %v210_v15 = vpop.xlane.xlu0 %209 }
  0xe7   : > { %v214_v17 = vmul.f32 0.00390625, %v210_v15 }
  0xe9   : > { %v226_v21 = vrot.slane %v214_v17, %v225_v16 }
  0xea   : > { %v213_v19 = vpop.xlane.xlu0 %212 }
  0xeb   : > { %v215_v20 = vmul.f32 0.00390625, %v213_v19 }
  0xed   : > { %v231_v22 = vrot.slane %v215_v20, %v230_v18 }
  0xef   : > { %v233_v23 = vsel %vm232_vm1, %v231_v22, %v226_v21 }
  0xf0   : > { %457 = vmatmul.mubr.msk.f32.vlgmr.msra.gmra.mrb[0].mxu0 %vm234_vm2, %v233_v23 }
 0x1c3   : > { %v303_v25 = vpop.f32.mrb[0].mxu0 }
 0x1c4   : > { %v304_v26 = vadd.f32 %v303_v25, %v218_v24  ;;  %v458_v27 = vpop.f32.mrb[1].mxu0 }
 0x1c6   : > { %v441_v28 = vmul.f32 -1.442695, %v304_v26 }
 0x1c8   : > { %528 = vpow2.f32 %v441_v28 }
 0x1d2   : > { %v529_v29 = vpop.eup %528 }
 0x1d3   : > { %v310_v30 = vadd.f32 1.0, %v529_v29 }
 0x1d5   : > { %530 = vrcp.f32 %v310_v30 }
 0x1df   : > { %v531_v32 = vpop.eup %530 }
 0x1e0   : > { %v316_v33 = vrot.slane %v531_v32, %v315_v31 }
 0x1e2   : > { %318 = vbcast.lane.b32.xlu1 %v316_v33, 256 }
 0x1e6   : > { %322 = vbcast.lane.b32.xlu1 %v316_v33, 264 }
 0x254   : > { %v319_v34 = vpop.permute.xlu1 %318 }
 0x255   : > { %v324_v35 = vmul.f32 %v319_v34, %v204_v0  ;;  %v325_v36 = vmul.f32 %v319_v34, %v205_v1 }
 0x257   : > { %328 = vst [vmem:[%s203_s4] sm:$0xff] %v324_v35  ;;  %329 = vst [vmem:[%s203_s4 + $0x8] sm:$0xff] %v325_v36 }
 0x258   : > { %v323_v37 = vpop.permute.xlu1 %322 }
 0x259   : > { %v326_v38 = vmul.f32 %v323_v37, %v206_v2  ;;  %v327_v39 = vmul.f32 %v323_v37, %v207_v4 }
 0x25b   : > { %330 = vst [vmem:[%s203_s4 + $0x10] sm:$0xff] %v326_v38  ;;  %331 = vst [vmem:[%s203_s4 + $0x18] sm:$0xff] %v327_v39 }
 0x25c   : > { %603 = shalt.err (!%p600_p7)
}
 0x25d   : > { %s604_s30 = scalar_lea.hbm %s858_s11, 512  ;;  %s608_s8 = scalar_lea.hbm %s905_s3, 1024 }
 0x25e   : > { %p605_p9 = scmp.ne.s32.totalorder %s858_s11, %s604_s30  ;;  %p609_p5 = scmp.lt.u32.totalorder %s858_s11, %s905_s3 }
 0x25f   : > { %p610_p11 = scmp.lt.u32.totalorder %s608_s8, %s604_s30  ;;  %p612_p4 = scmp.lt.u32.totalorder %s604_s30, %s858_s11 }
 0x260   : > { %p606_p2 = pnand %p605_p9, %p785_p12 }
 0x261   : > { %p611_p1 = por %p610_p11, %p609_p5 }
 0x262   : > { %p607_p0 = pneg %p606_p2 }
 0x263   : > { %p613_p6 = por %p612_p4, %p611_p1 }
 0x265   : > { %p614_p8 = pnand %p613_p6, %p607_p0 }
 0x267   : > { %617 = shalt.err (!%p614_p8)
}
 0x268   : > { %s672_s20 = smov 256   ;;  %s673_s4 = smov 16  }
 0x269   : > { %468 = dma.vmem_to_hbm [thread:$0]  (%p785_p12), %s853_s25, 512, %s858_s11, %s333_s27, %s672_s20, %s672_s20, %s673_s4  }
 0x26a PF: > { %s361_s26 = sand.u32 1, %s648_s12   ;;  %p920_p10 = scmp.ne.s32.totalorder %s910_s19, 0 }
 0x26b   : > { %p921_p13 = scmp.ge.s32.totalorder %s660_s15, 2  ;;  %s362_s5 = scalar_lea.sflag [#allocation4], %s361_s26 }
 0x26d   : > { %p479_p3 = pnand %p921_p13, %p920_p10 }
 0x26f   : > { %643 = dma.done.wait (!%p479_p3), %s362_s5, 512  }
 0x270   : > { %645 = vsyncadd (!%p479_p3), %s362_s5, 4294966784  ;;  %p17_p7 = scmp.ge.s32.totalorder %s750_s24, 4   ;;  %s922_s12 = smov %s652_s13 }
 0x271   : > { %s923_s13 = smov %s656_s14  ;;  %s924_s14 = smov %s781_s17 }
 0x272   : > { %s925_s15 = smov %s750_s24  ;;  %19 = sbr.rel (!%p17_p7) target bundleno = 6 (0x6), region = 81 }
 0x279   :  { %367 = vsyncpa [#allocation3], 1 }
 0x27a   :  { %369 = vsyncpa [#allocation3 + $0x1], 1 }
 0x27b   :  { %370 = vsyncpa [#allocation6], 1 }
 0x27c   :  { %371 = vsyncpa [#allocation4], 1 }
 0x27d   :  { %373 = vsyncpa [#allocation4 + $0x1], 1 }

</bundles_post_ra>
